<compile_context>
chip_gen: v5e
topology: v5e:2x2
jax: 0.10.0
libtpu: 0.0.40
codegen_flags: <defaults>
</compile_context>

<pallas_src>
import jax
import jax.numpy as jnp
from jax.experimental import pallas as pl
from jax.experimental.pallas import tpu as pltpu


def _round_up(x, m):
    return ((x + m - 1) // m) * m


def _pick_lane_tile(s_raw, n_batch, target=32768):
    """Largest power-of-two multiple of 128 <= min(target, round_up(s_raw, 128)),
    halved (not below 1024) until the grid has >= 8 steps when possible."""
    s128 = _round_up(s_raw, 128)
    tile = 128
    while tile * 2 <= min(target, s128):
        tile *= 2
    while tile > 1024 and n_batch * ((s128 + tile - 1) // tile) < 8:
        tile //= 2
    return tile


def _make_conv_bn_relu_kernel(tap_offsets, tile, window):
    """tap_offsets: static flat-lane offsets of the KH*KW taps (kh*dil*Wp + kw*dil).
    window = tile + pad_win lanes loaded per step (128-aligned dynamic start)."""

    def kernel(x_ref, w_ref, b_ref, o_ref):
        # x_ref: (1, Cin, Lin)       bf16  whole padded+flattened sample (resident per n)
        # w_ref: (KH*KW, Cout, Cin)  bf16  BN-scale-folded per-tap weights (resident)
        # b_ref: (Cout, 1)           f32   folded BN bias (resident)
        # o_ref: (1, Cout, tile)     f32   lane-dense output tile
        s = pl.program_id(1)
        base = pl.multiple_of(s * tile, 128)
        # One aligned dynamic-start load per step, shared by all taps.
        win = x_ref[0, :, pl.ds(base, window)]                 # (Cin, tile + pad_win)
        acc = None
        for t, off in enumerate(tap_offsets):                  # static unroll (KH*KW taps)
            xt = win[:, off:off + tile]                        # (Cin, tile) static slice
            part = jnp.dot(w_ref[t], xt,
                           preferred_element_type=jnp.float32)  # (Cout, tile) f32
            acc = part if acc is None else acc + part
        y = jnp.maximum(acc + b_ref[...], 0.0)                  # fused BN bias + ReLU
        o_ref[0] = y.astype(o_ref.dtype)

    return kernel


def basic_conv2d_relu(x_nchw, weight, gamma, beta, running_mean, running_var,
                      *, stride=1, padding=0, dilation=1, eps=1e-5):
    """Fused Conv2d(bias=False) + BatchNorm2d(eval) + ReLU.

    x_nchw : (N, Cin, H, W)       float32
    weight : (Cout, Cin, KH, KW)  float32 (PyTorch layout)
    returns: (N, Cout, Ho, Wo)    float32
    """
    N, Cin, H, W = x_nchw.shape
    Cout, _, KH, KW = weight.shape

    # stride-1 geometry; stride > 1 is handled by subsampling the stride-1 output.
    Hp, Wp = H + 2 * padding, W + 2 * padding
    Ho1 = Hp - dilation * (KH - 1)
    Wo1 = Wp - dilation * (KW - 1)

    # ---- fold inference BatchNorm into the conv weights / a bias vector ----
    scale = gamma / jnp.sqrt(running_var + eps)                 # (Cout,)
    bias = beta - running_mean * scale                          # (Cout,)
    w_folded = weight * scale[:, None, None, None]              # (Cout, Cin, KH, KW)
    w_taps = jnp.transpose(w_folded, (2, 3, 0, 1)).reshape(KH * KW, Cout, Cin)
    w_taps = w_taps.astype(jnp.bfloat16)
    bias_col = bias.reshape(Cout, 1).astype(jnp.float32)

    # ---- lane-dense flat layout + tiling ----
    s_raw = Ho1 * Wp                      # output rows x padded width (cols >= Wo1 garbage)
    tile = _pick_lane_tile(s_raw, N)
    s_pad = _round_up(s_raw, tile)        # lane extent padded to a tile multiple (>=128)
    max_off = (KH - 1) * dilation * Wp + (KW - 1) * dilation
    pad_win = _round_up(max_off, 128) if max_off else 0
    lin = s_pad + pad_win                 # per-sample flat input length (128-multiple)
    window = tile + pad_win

    x_pad = jnp.pad(x_nchw,
                    ((0, 0), (0, 0), (padding, padding), (padding, padding)))
    x_flat = x_pad.reshape(N, Cin, Hp * Wp)
    x_flat = jnp.pad(x_flat, ((0, 0), (0, 0), (0, lin - Hp * Wp)))
    x_flat = x_flat.astype(jnp.bfloat16)

    offsets = [kh * dilation * Wp + kw * dilation
               for kh in range(KH) for kw in range(KW)]

    grid = (N, s_pad // tile)

    # VMEM budget: 2x double-buffered input block + 2x output block + working set.
    in_block = Cin * lin * 2
    out_block = Cout * tile * 4
    work = 2 * Cin * window * 2 + 4 * out_block
    vmem_limit = int(min(96 << 20,
                         max(32 << 20, 2 * in_block + 2 * out_block + work + (1 << 20))))

    flops = 2 * N * Cout * (KH * KW * Cin) * Ho1 * Wo1
    bytes_accessed = int(x_flat.size * 2 + w_taps.size * 2 + bias_col.size * 4
                         + N * Cout * s_pad * 4)

    out_flat = pl.pallas_call(
        _make_conv_bn_relu_kernel(offsets, tile, window),
        out_shape=jax.ShapeDtypeStruct((N, Cout, s_pad), x_nchw.dtype),
        grid_spec=pltpu.PrefetchScalarGridSpec(
            num_scalar_prefetch=0,
            grid=grid,
            in_specs=[
                # whole flattened sample, resident across the lane-tile axis
                pl.BlockSpec((1, Cin, lin), lambda n, s: (n, 0, 0)),
                # per-tap folded weights / bias: constant index_map -> VMEM resident
                pl.BlockSpec((KH * KW, Cout, Cin), lambda n, s: (0, 0, 0)),
                pl.BlockSpec((Cout, 1), lambda n, s: (0, 0)),
            ],
            out_specs=pl.BlockSpec((1, Cout, tile), lambda n, s: (n, 0, s)),
        ),
        compiler_params=pltpu.CompilerParams(
            dimension_semantics=("parallel", "parallel"),
            vmem_limit_bytes=vmem_limit,
        ),
        cost_estimate=pl.CostEstimate(flops=flops, transcendentals=0,
                                      bytes_accessed=bytes_accessed),
    )(x_flat, w_taps, bias_col)

    # (N, Cout, S_pad) -> drop lane padding / garbage columns -> NCHW.
    out = out_flat[:, :, :Ho1 * Wp].reshape(N, Cout, Ho1, Wp)[:, :, :, :Wo1]
    if stride > 1:
        # TODO(synk): dedicated strided-tap kernel would avoid the stride^2 extra work.
        out = out[:, :, ::stride, ::stride]
    return out


def _reference(x_nchw, weight, gamma, beta, running_mean, running_var,
               *, stride, padding, dilation, eps=1e-5):
    y = jax.lax.conv_general_dilated(
        x_nchw, weight,
        window_strides=(stride, stride),
        padding=((padding, padding), (padding, padding)),
        rhs_dilation=(dilation, dilation),
        dimension_numbers=("NCHW", "OIHW", "NCHW"),
        precision=jax.lax.Precision.HIGHEST)
    scale = gamma / jnp.sqrt(running_var + eps)
    bias = beta - running_mean * scale
    y = y * scale[None, :, None, None] + bias[None, :, None, None]
    return jnp.maximum(y, 0.0)


if __name__ == "__main__":
    # BasicConv2dReLu(in_planes=4, out_planes=8, kernel_size=3, stride=1,
    #                 padding=1, dilation=1)
    N, CIN, H, W = 2, 4, 16, 16
    COUT, K = 8, 3
    STRIDE, PAD, DIL = 1, 1, 1

    key = jax.random.PRNGKey(0)
    kx, kw, kg, kb, km, kv = jax.random.split(key, 6)

    x = jax.random.normal(kx, (N, CIN, H, W), dtype=jnp.float32)
    weight = jax.random.normal(kw, (COUT, CIN, K, K), dtype=jnp.float32) * 0.1
    gamma = 1.0 + 0.1 * jax.random.normal(kg, (COUT,), dtype=jnp.float32)
    beta = 0.1 * jax.random.normal(kb, (COUT,), dtype=jnp.float32)
    running_mean = 0.1 * jax.random.normal(km, (COUT,), dtype=jnp.float32)
    running_var = jnp.abs(jax.random.normal(kv, (COUT,), dtype=jnp.float32)) + 0.5

    out = basic_conv2d_relu(x, weight, gamma, beta, running_mean, running_var,
                            stride=STRIDE, padding=PAD, dilation=DIL)
    out = jax.block_until_ready(out)

    ref = _reference(x, weight, gamma, beta, running_mean, running_var,
                     stride=STRIDE, padding=PAD, dilation=DIL)
    assert out.shape == (N, COUT, H, W)
    # bf16 MXU operands (f32 accumulate) vs full-f32 reference -> modest tol.
    assert jnp.allclose(out, ref, atol=3e-2, rtol=3e-2), "mismatch vs reference"

    print("KERNEL_OK")
</pallas_src>

<mosaic_0001>
module attributes {stable_mosaic.version = 11 : i64} {
  func.func @kernel(%arg0: i32, %arg1: i32, %arg2: memref<1x4x640xbf16, #tpu.memory_space<vmem>>, %arg3: memref<9x8x4xbf16, #tpu.memory_space<vmem>>, %arg4: memref<8x1xf32, #tpu.memory_space<vmem>>, %arg5: memref<1x8x256xf32, #tpu.memory_space<vmem>>) attributes {dimension_semantics = [#tpu.dimension_semantics<parallel>, #tpu.dimension_semantics<parallel>], iteration_bounds = array<i64: 2, 2>, scalar_prefetch = 0 : i64, scratch_operands = 0 : i64, tpu.core_type = #tpu.core_type<tc>, window_params = [{transform_indices = @transform_0, window_bounds = array<i64: 1, 4, 640>}, {pipeline_mode = #tpu.pipeline_mode<synchronous>, transform_indices = @transform_1, window_bounds = array<i64: 9, 8, 4>}, {pipeline_mode = #tpu.pipeline_mode<synchronous>, transform_indices = @transform_2, window_bounds = array<i64: 8, 1>}, {transform_indices = @transform_3, window_bounds = array<i64: 1, 8, 256>}]} {
    %c256_i32 = arith.constant 256 : i32
    %0 = arith.muli %arg1, %c256_i32 : i32
    %1 = tpu.assume_multiple %0, 128 : i32
    %c0 = arith.constant 0 : index
    %c0_0 = arith.constant 0 : index
    %2 = arith.index_cast %1 : i32 to index
    %3 = vector.load %arg2[%c0, %c0_0, %2] : memref<1x4x640xbf16, #tpu.memory_space<vmem>>, vector<1x4x384xbf16>
    %4 = vector.shape_cast %3 : vector<1x4x384xbf16> to vector<4x384xbf16>
    %5 = vector.extract_strided_slice %4 {offsets = [0, 0], sizes = [4, 256], strides = [1, 1]} : vector<4x384xbf16> to vector<4x256xbf16>
    %c0_1 = arith.constant 0 : index
    %c0_2 = arith.constant 0 : index
    %c0_3 = arith.constant 0 : index
    %6 = vector.load %arg3[%c0_1, %c0_2, %c0_3] : memref<9x8x4xbf16, #tpu.memory_space<vmem>>, vector<1x8x4xbf16>
    %7 = vector.shape_cast %6 : vector<1x8x4xbf16> to vector<8x4xbf16>
    %cst = arith.constant dense<0.000000e+00> : vector<8x256xf32>
    %8 = tpu.matmul %7, %5, %cst {dimension_numbers = #tpu.dot_dimension_numbers<[1], [0], [0], [1], [0, 0, 1, 1], [], []>} : vector<8x4xbf16>, vector<4x256xbf16>, vector<8x256xf32> -> vector<8x256xf32>
    %9 = vector.extract_strided_slice %4 {offsets = [0, 1], sizes = [4, 256], strides = [1, 1]} : vector<4x384xbf16> to vector<4x256xbf16>
    %c1 = arith.constant 1 : index
    %c0_4 = arith.constant 0 : index
    %c0_5 = arith.constant 0 : index
    %10 = vector.load %arg3[%c1, %c0_4, %c0_5] : memref<9x8x4xbf16, #tpu.memory_space<vmem>>, vector<1x8x4xbf16>
    %11 = vector.shape_cast %10 : vector<1x8x4xbf16> to vector<8x4xbf16>
    %cst_6 = arith.constant dense<0.000000e+00> : vector<8x256xf32>
    %12 = tpu.matmul %11, %9, %cst_6 {dimension_numbers = #tpu.dot_dimension_numbers<[1], [0], [0], [1], [0, 0, 1, 1], [], []>} : vector<8x4xbf16>, vector<4x256xbf16>, vector<8x256xf32> -> vector<8x256xf32>
    %13 = arith.addf %8, %12 : vector<8x256xf32>
    %14 = vector.extract_strided_slice %4 {offsets = [0, 2], sizes = [4, 256], strides = [1, 1]} : vector<4x384xbf16> to vector<4x256xbf16>
    %c2 = arith.constant 2 : index
    %c0_7 = arith.constant 0 : index
    %c0_8 = arith.constant 0 : index
    %15 = vector.load %arg3[%c2, %c0_7, %c0_8] : memref<9x8x4xbf16, #tpu.memory_space<vmem>>, vector<1x8x4xbf16>
    %16 = vector.shape_cast %15 : vector<1x8x4xbf16> to vector<8x4xbf16>
    %cst_9 = arith.constant dense<0.000000e+00> : vector<8x256xf32>
    %17 = tpu.matmul %16, %14, %cst_9 {dimension_numbers = #tpu.dot_dimension_numbers<[1], [0], [0], [1], [0, 0, 1, 1], [], []>} : vector<8x4xbf16>, vector<4x256xbf16>, vector<8x256xf32> -> vector<8x256xf32>
    %18 = arith.addf %13, %17 : vector<8x256xf32>
    %19 = vector.extract_strided_slice %4 {offsets = [0, 18], sizes = [4, 256], strides = [1, 1]} : vector<4x384xbf16> to vector<4x256xbf16>
    %c3 = arith.constant 3 : index
    %c0_10 = arith.constant 0 : index
    %c0_11 = arith.constant 0 : index
    %20 = vector.load %arg3[%c3, %c0_10, %c0_11] : memref<9x8x4xbf16, #tpu.memory_space<vmem>>, vector<1x8x4xbf16>
    %21 = vector.shape_cast %20 : vector<1x8x4xbf16> to vector<8x4xbf16>
    %cst_12 = arith.constant dense<0.000000e+00> : vector<8x256xf32>
    %22 = tpu.matmul %21, %19, %cst_12 {dimension_numbers = #tpu.dot_dimension_numbers<[1], [0], [0], [1], [0, 0, 1, 1], [], []>} : vector<8x4xbf16>, vector<4x256xbf16>, vector<8x256xf32> -> vector<8x256xf32>
    %23 = arith.addf %18, %22 : vector<8x256xf32>
    %24 = vector.extract_strided_slice %4 {offsets = [0, 19], sizes = [4, 256], strides = [1, 1]} : vector<4x384xbf16> to vector<4x256xbf16>
    %c4 = arith.constant 4 : index
    %c0_13 = arith.constant 0 : index
    %c0_14 = arith.constant 0 : index
    %25 = vector.load %arg3[%c4, %c0_13, %c0_14] : memref<9x8x4xbf16, #tpu.memory_space<vmem>>, vector<1x8x4xbf16>
    %26 = vector.shape_cast %25 : vector<1x8x4xbf16> to vector<8x4xbf16>
    %cst_15 = arith.constant dense<0.000000e+00> : vector<8x256xf32>
    %27 = tpu.matmul %26, %24, %cst_15 {dimension_numbers = #tpu.dot_dimension_numbers<[1], [0], [0], [1], [0, 0, 1, 1], [], []>} : vector<8x4xbf16>, vector<4x256xbf16>, vector<8x256xf32> -> vector<8x256xf32>
    %28 = arith.addf %23, %27 : vector<8x256xf32>
    %29 = vector.extract_strided_slice %4 {offsets = [0, 20], sizes = [4, 256], strides = [1, 1]} : vector<4x384xbf16> to vector<4x256xbf16>
    %c5 = arith.constant 5 : index
    %c0_16 = arith.constant 0 : index
    %c0_17 = arith.constant 0 : index
    %30 = vector.load %arg3[%c5, %c0_16, %c0_17] : memref<9x8x4xbf16, #tpu.memory_space<vmem>>, vector<1x8x4xbf16>
    %31 = vector.shape_cast %30 : vector<1x8x4xbf16> to vector<8x4xbf16>
    %cst_18 = arith.constant dense<0.000000e+00> : vector<8x256xf32>
    %32 = tpu.matmul %31, %29, %cst_18 {dimension_numbers = #tpu.dot_dimension_numbers<[1], [0], [0], [1], [0, 0, 1, 1], [], []>} : vector<8x4xbf16>, vector<4x256xbf16>, vector<8x256xf32> -> vector<8x256xf32>
    %33 = arith.addf %28, %32 : vector<8x256xf32>
    %34 = vector.extract_strided_slice %4 {offsets = [0, 36], sizes = [4, 256], strides = [1, 1]} : vector<4x384xbf16> to vector<4x256xbf16>
    %c6 = arith.constant 6 : index
    %c0_19 = arith.constant 0 : index
    %c0_20 = arith.constant 0 : index
    %35 = vector.load %arg3[%c6, %c0_19, %c0_20] : memref<9x8x4xbf16, #tpu.memory_space<vmem>>, vector<1x8x4xbf16>
    %36 = vector.shape_cast %35 : vector<1x8x4xbf16> to vector<8x4xbf16>
    %cst_21 = arith.constant dense<0.000000e+00> : vector<8x256xf32>
    %37 = tpu.matmul %36, %34, %cst_21 {dimension_numbers = #tpu.dot_dimension_numbers<[1], [0], [0], [1], [0, 0, 1, 1], [], []>} : vector<8x4xbf16>, vector<4x256xbf16>, vector<8x256xf32> -> vector<8x256xf32>
    %38 = arith.addf %33, %37 : vector<8x256xf32>
    %39 = vector.extract_strided_slice %4 {offsets = [0, 37], sizes = [4, 256], strides = [1, 1]} : vector<4x384xbf16> to vector<4x256xbf16>
    %c7 = arith.constant 7 : index
    %c0_22 = arith.constant 0 : index
    %c0_23 = arith.constant 0 : index
    %40 = vector.load %arg3[%c7, %c0_22, %c0_23] : memref<9x8x4xbf16, #tpu.memory_space<vmem>>, vector<1x8x4xbf16>
    %41 = vector.shape_cast %40 : vector<1x8x4xbf16> to vector<8x4xbf16>
    %cst_24 = arith.constant dense<0.000000e+00> : vector<8x256xf32>
    %42 = tpu.matmul %41, %39, %cst_24 {dimension_numbers = #tpu.dot_dimension_numbers<[1], [0], [0], [1], [0, 0, 1, 1], [], []>} : vector<8x4xbf16>, vector<4x256xbf16>, vector<8x256xf32> -> vector<8x256xf32>
    %43 = arith.addf %38, %42 : vector<8x256xf32>
    %44 = vector.extract_strided_slice %4 {offsets = [0, 38], sizes = [4, 256], strides = [1, 1]} : vector<4x384xbf16> to vector<4x256xbf16>
    %c8 = arith.constant 8 : index
    %c0_25 = arith.constant 0 : index
    %c0_26 = arith.constant 0 : index
    %45 = vector.load %arg3[%c8, %c0_25, %c0_26] : memref<9x8x4xbf16, #tpu.memory_space<vmem>>, vector<1x8x4xbf16>
    %46 = vector.shape_cast %45 : vector<1x8x4xbf16> to vector<8x4xbf16>
    %cst_27 = arith.constant dense<0.000000e+00> : vector<8x256xf32>
    %47 = tpu.matmul %46, %44, %cst_27 {dimension_numbers = #tpu.dot_dimension_numbers<[1], [0], [0], [1], [0, 0, 1, 1], [], []>} : vector<8x4xbf16>, vector<4x256xbf16>, vector<8x256xf32> -> vector<8x256xf32>
    %48 = arith.addf %43, %47 : vector<8x256xf32>
    %c0_28 = arith.constant 0 : index
    %c0_29 = arith.constant 0 : index
    %49 = vector.load %arg4[%c0_28, %c0_29] : memref<8x1xf32, #tpu.memory_space<vmem>>, vector<8x1xf32>
    %50 = vector.broadcast %49 : vector<8x1xf32> to vector<8x256xf32>
    %51 = arith.addf %48, %50 : vector<8x256xf32>
    %cst_30 = arith.constant 0.000000e+00 : f32
    %52 = vector.broadcast %cst_30 : f32 to vector<8x256xf32>
    %53 = arith.maximumf %51, %52 : vector<8x256xf32>
    %c0_31 = arith.constant 0 : index
    %c0_32 = arith.constant 0 : index
    %c0_33 = arith.constant 0 : index
    %54 = vector.load %arg5[%c0_31, %c0_32, %c0_33] : memref<1x8x256xf32, #tpu.memory_space<vmem>>, vector<1x8x256xf32>
    %55 = vector.shape_cast %54 : vector<1x8x256xf32> to vector<8x256xf32>
    %56 = vector.shape_cast %53 : vector<8x256xf32> to vector<1x8x256xf32>
    tpu.vector_store %arg5[%c0_31, %c0_32, %c0_33], %56 {strides = array<i32>} : memref<1x8x256xf32, #tpu.memory_space<vmem>>, vector<1x8x256xf32>,
    return
  }
  func.func @transform_0(%arg0: i32, %arg1: i32) -> (i32, i32, i32) {
    %c0_i32 = arith.constant 0 : i32
    %c0_i32_0 = arith.constant 0 : i32
    %c0_i32_1 = arith.constant 0 : i32
    return %arg0, %c0_i32, %c0_i32_0 : i32, i32, i32
  }
  func.func @transform_1(%arg0: i32, %arg1: i32) -> (i32, i32, i32) {
    %c0_i32 = arith.constant 0 : i32
    %c0_i32_0 = arith.constant 0 : i32
    %c0_i32_1 = arith.constant 0 : i32
    %c0_i32_2 = arith.constant 0 : i32
    return %c0_i32, %c0_i32_0, %c0_i32_1 : i32, i32, i32
  }
  func.func @transform_2(%arg0: i32, %arg1: i32) -> (i32, i32) {
    %c0_i32 = arith.constant 0 : i32
    %c0_i32_0 = arith.constant 0 : i32
    %c0_i32_1 = arith.constant 0 : i32
    return %c0_i32, %c0_i32_0 : i32, i32
  }
  func.func @transform_3(%arg0: i32, %arg1: i32) -> (i32, i32, i32) {
    %c0_i32 = arith.constant 0 : i32
    %c0_i32_0 = arith.constant 0 : i32
    return %arg0, %c0_i32, %arg1 : i32, i32, i32
  }
}

</mosaic_0001>

<bundles_post_ra>
// kernel: tpu_custom_call.1
= control target key start
LH: loop header
LB: loop body
LE: loop exit
PB: predicated region body
PF: predicated region fallthrough
CT: control target
= control target key end

     0   :  { %8 = vsyncpa [#allocation3], 0  ;;  %s1216_s0 = inlined_call_operand.vmem [shape: bf16[2,4,640], index: 0, kind: input, shape index: {}]   ;;  %s1217_s1 = inlined_call_operand.vmem [shape: bf16[9,8,4], index: 1, kind: input, shape index: {}]   ;;  %s1218_s2 = inlined_call_operand.vmem [shape: f32[8,1], index: 2, kind: input, shape index: {}]   ;;  %s1219_s3 = inlined_call_operand.hbm [shape: f32[2,8,512], index: 3, kind: output, shape index: {}]  }
   0x1   :  { %10 = vsyncpa [#allocation3 + $0x1], 0  ;;  %s1023_s12 = smov 0   ;;  %s1025_s13 = smov 0  }
   0x2   :  { %s1027_s14 = smov 0   ;;  %s1029_s15 = smov 0  }
   0x3   :  { %s1031_s16 = smov 0   ;;  %s1033_s17 = smov 0  }
   0x4   :  { %s1035_s18 = smov 0   ;;  %s1037_s19 = smov 0  }
   0x5 LB: > { %s775_s20 = sadd.s32 4294967295, %s992_s19   ;;  %s776_s21 = sadd.s32 4294967294, %s992_s19   ;;  %s992_s19 = sphi %s1037_s19, %s16_s19   ;;  %s988_s18 = sphi %s1035_s18, %s1228_s18   ;;  %s984_s17 = sphi %s1033_s17, %s1227_s17   ;;  %s980_s16 = sphi %s1031_s16, %s1226_s16   ;;  %s976_s15 = sphi %s1029_s15, %s1225_s15   ;;  %s972_s14 = sphi %s1027_s14, %s1224_s14   ;;  %s968_s13 = sphi %s1025_s13, %s1223_s13   ;;  %s964_s12 = sphi %s1023_s12, %s1222_s12  }
   0x6   : > { %s25_s22 = sadd.s32 1, %s984_s17  ;;  %s28_s23 = sadd.s32 1, %s988_s18 }
   0x7   : > { %p26_p0 = scmp.ge.s32.totalorder %s25_s22, 2  ;;  %p115_p1 = scmp.ne.s32.totalorder %s972_s14, %s968_s13 }
   0x8   : > { %p116_p2 = scmp.eq.s32.totalorder %s775_s20, 3  ;;  %p121_p5 = scmp.ne.s32.totalorder %s968_s13, %s964_s12 }
   0x9   : > { %s1230_s22 = smov (%p26_p0, %s25_s22), 0  ;;  %s1232_s23 = smov (!%p26_p0, %s28_s23), %s988_s18 }
   0xa   : > { %s101_s24 = ssub.s32 %s984_s17, %s1230_s22  ;;  %p1074_p3 = por %p116_p2, %p115_p1 }
   0xb   : > { %p30_p4 = scmp.ge.s32.totalorder %s1232_s23, 2  ;;  %p122_p6 = scmp.eq.s32.totalorder %s776_s21, 3 }
   0xc   : > { %p779_p7 = scmp.ge.s32.totalorder %s992_s19, 1  ;;  %p154_p9 = scmp.lt.s32.totalorder %s992_s19, 5 }
   0xd   : > { %s1234_s23 = smov (%p30_p4, %s1232_s23), 0  ;;  %p1083_p8 = por %p122_p6, %p121_p5 }
   0xe   : > { %s100_s27 = ssub.s32 %s988_s18, %s1234_s23  ;;  %s105_s28 = sadd.s32 1, %s972_s14 }
   0xf   : > { %s102_s29 = sor.u32 %s101_s24, %s100_s27  ;;  %p155_p10 = pnand %p779_p7, %p154_p9 }
  0x10   : > { %p103_p11 = scmp.eq.s32.totalorder %s102_s29, 0  ;;  %p178_p12 = scmp.lt.s32.totalorder (!%p155_p10), %s980_s16, 1 }
  0x11   : > { %158 = sbr.rel (%p155_p10) target bundleno = 366 (0x16e), region = 32  ;;  %s782_s4 = sshll.u32 (!%p155_p10), %s976_s15, 8 }
  0x12   : > { %s1092_s30 = scalar_select %p103_p11, %s972_s14, %s105_s28  }
  0x13   : > { %s186_s5 = sshra.s32 (!%p155_p10), %s782_s4, 7  ;;  %s994_s21 = smov (!%p155_p10), 127  }
  0x14   : > { %s783_s8 = sshll.u32 (!%p155_p10), %s186_s5, 1  ;;  %s995_s24 = smov (!%p155_p10), 126  }
  0x15   : > { %s996_s27 = smov (!%p155_p10), 110   ;;  %s997_s28 = smov (!%p155_p10), 109  }
  0x16   : > { %s179_s6 = scalar_select %p178_p12, %s980_s16, 1  ;;  %vm215_vm0 = vcmask 1041408   ;;  %v191_v29 = vld [vmem:[%s1217_s1] sm:$0xf]  ;;  %vm211_vm1 = vcmask 31744   ;;  %vm299_vm2 = vcmask 1031168  }
  0x17   : > { %s998_s29 = smov 108   ;;  %s999_s4 = smov 92   ;;  %vm208_vm3 = vcmask 1039360   ;;  %v784_v41 = vld [vmem:[%s1217_s1 + $0x4] sm:$0xf]  ;;  %vm354_vm4 = vcmask 900096  }
  0x18   : > { %s816_s7 = smul.u32 10, %s179_s6  ;;  %s1000_s5 = smov 91   ;;  %v789_v49 = vld [vmem:[%s1217_s1 + $0x8] sm:$0xf]  ;;  %v792_v53 = vld [vmem:[%s1217_s1 + $0xc] sm:$0xf] }
  0x19   : > { %s1001_s6 = smov 90   ;;  %vm409_vm5 = vcmask 891904   ;;  %vm464_vm6 = vcmask 883712   ;;  %v795_v62 = vld [vmem:[%s1217_s1 + $0x10] sm:$0xf]  ;;  %vm519_vm7 = vcmask 752640  }
  0x1a   : > { %s182_s11 = scalar_lea.vmem %s1216_s0, %s816_s7  ;;  %vm574_vm8 = vcmask 744448   ;;  %vm629_vm9 = vcmask 736256  }
  0x1b   : > { %s189_s20 = scalar_lea.vmem %s182_s11, %s783_s8 }
  0x1c   : > { %v190_v0 = vld [vmem:[%s189_s20] sm:$0x3f] }
  0x1d   : > { %195 = vst [vmem:[#allocation1] ss:$4 sm:$0xff] %v190_v0 }
  0x24   : > { %v196_v1 = vld.sshfl [vmem:[#allocation1] sm:$0xff pattern:$0x73625140]  ;;  %v200_v2 = vld.sshfl [vmem:[#allocation1 + $0x10] sm:$0xff pattern:$0x73625140] }
  0x25   : > { %202 = vrot.lane.b32.xlu0 %v196_v1, %s994_s21  ;;  %206 = vrot.lane.b32.xlu1 %v200_v2, %s994_s21  ;;  %v198_v3 = vld.sshfl [vmem:[#allocation1 + $0x8] sm:$0xff pattern:$0x73625140] }
  0x26   : > { %248 = vst [vmem:[#allocation1] ss:$4 sm:$0xff] %v190_v0 }
  0x2d   : > { %204 = vrot.lane.b32.xlu0 %v198_v3, %s994_s21  ;;  %v249_v4 = vld.sshfl [vmem:[#allocation1] sm:$0xff pattern:$0x73625140]  ;;  %v250_v5 = vld.sshfl [vmem:[#allocation1 + $0x8] sm:$0xff pattern:$0x73625140] }
  0x2e   : > { %286 = vst [vmem:[#allocation1] ss:$4 sm:$0xff] %v190_v0  ;;  %v254_v27 = vsel %vm215_vm0, %v249_v4, 0  ;;  %v256_v28 = vsel %vm215_vm0, %v250_v5, 0  ;;  %v798_v5 = vld [vmem:[%s1217_s1 + $0x14] sm:$0xf] }
  0x2f   : > { %265 = vmatpush.bf16.msra.mxu2 %v254_v27  ;;  %278 = vmatpush.bf16.msra.mxu3 %v256_v28  ;;  %s811_s21 = sshll.u32 %s976_s15, 1 }
  0x32   : > { %787 = vmatmul.msk.bf16.vlgmr.msra.gmra.mxu2 %vm211_vm1, %v191_v29  ;;  %788 = vmatmul.msk.bf16.vlgmr.msra.gmra.mxu3 %vm211_vm1, %v191_v29 }
  0x35   : > { %v287_v6 = vld.sshfl [vmem:[#allocation1] sm:$0xff pattern:$0x73625140]  ;;  %v289_v7 = vld.sshfl [vmem:[#allocation1 + $0x8] sm:$0xff pattern:$0x73625140] }
  0x36   : > { %293 = vrot.lane.b32.xlu1 %v287_v6, %s995_s24  ;;  %v291_v8 = vld.sshfl [vmem:[#allocation1 + $0x10] sm:$0xff pattern:$0x73625140]  ;;  %295 = vrot.lane.b32.xlu2 %v289_v7, %s995_s24  ;;  %v669_v6 = vld [vmem:[%s1218_s2] sm:$0xff]  ;;  %v1002_v7 = vmov 0  }
  0x37   : > { %341 = vst [vmem:[#allocation1] ss:$4 sm:$0xff] %v190_v0  ;;  %897 = vset.pattern.permute.xlu0 %v1002_v7 }
  0x3e   : > { %v346_v9 = vld.sshfl [vmem:[#allocation1 + $0x10] sm:$0xff pattern:$0x73625140]  ;;  %v344_v10 = vld.sshfl [vmem:[#allocation1 + $0x8] sm:$0xff pattern:$0x73625140]  ;;  %297 = vrot.lane.b32.xlu2 %v291_v8, %s995_s24 }
  0x3f   : > { %350 = vrot.lane.b32.xlu1 %v344_v10, %s996_s27  ;;  %v342_v11 = vld.sshfl [vmem:[#allocation1] sm:$0xff pattern:$0x73625140]  ;;  %s812_s24 = sshll.u32 %s980_s16, 2 }
  0x40   : > { %348 = vrot.lane.b32.xlu0 %v342_v11, %s996_s27  ;;  %396 = vst [vmem:[#allocation1] ss:$4 sm:$0xff] %v190_v0 }
  0x46   : > { %352 = vrot.lane.b32.xlu2 %v346_v9, %s996_s27  ;;  %s175_s27 = sand.u32 1, %s968_s13  }
  0x47   : > { %v399_v12 = vld.sshfl [vmem:[#allocation1 + $0x8] sm:$0xff pattern:$0x73625140]  ;;  %v401_v13 = vld.sshfl [vmem:[#allocation1 + $0x10] sm:$0xff pattern:$0x73625140] }
  0x48   : > { %405 = vrot.lane.b32.xlu1 %v399_v12, %s997_s28  ;;  %v397_v14 = vld.sshfl [vmem:[#allocation1] sm:$0xff pattern:$0x73625140]  ;;  %s682_s9 = scalar_lea.sflag [#allocation3], %s175_s27 }
  0x49   : > { %403 = vrot.lane.b32.xlu0 %v397_v14, %s997_s28  ;;  %451 = vst [vmem:[#allocation1] ss:$4 sm:$0xff] %v190_v0 }
  0x4e   : > { %407 = vrot.lane.b32.xlu2 %v401_v13, %s997_s28  ;;  %s693_s28 = sadd.s32 %s812_s24, %s811_s21  ;;  %s918_s24 = scalar_lea.hbm %s1219_s3, 64 }
  0x50   : > { %v454_v15 = vld.sshfl [vmem:[#allocation1 + $0x8] sm:$0xff pattern:$0x73625140]  ;;  %v456_v16 = vld.sshfl [vmem:[#allocation1 + $0x10] sm:$0xff pattern:$0x73625140] }
  0x51   : > { %460 = vrot.lane.b32.xlu1 %v454_v15, %s998_s29  ;;  %v452_v17 = vld.sshfl [vmem:[#allocation1] sm:$0xff pattern:$0x73625140]  ;;  %v801_v15 = vld [vmem:[%s1217_s1 + $0x18] sm:$0xf] }
  0x52   : > { %458 = vrot.lane.b32.xlu0 %v452_v17, %s998_s29  ;;  %506 = vst [vmem:[#allocation1] ss:$4 sm:$0xff] %v190_v0 }
  0x56   : > { %462 = vrot.lane.b32.xlu2 %v456_v16, %s998_s29  ;;  %s780_s29 = sshll.u32 %s175_s27, 4 }
  0x59   : > { %v509_v18 = vld.sshfl [vmem:[#allocation1 + $0x8] sm:$0xff pattern:$0x73625140]  ;;  %v511_v19 = vld.sshfl [vmem:[#allocation1 + $0x10] sm:$0xff pattern:$0x73625140] }
  0x5a   : > { %515 = vrot.lane.b32.xlu1 %v509_v18, %s999_s4  ;;  %v507_v20 = vld.sshfl [vmem:[#allocation1] sm:$0xff pattern:$0x73625140] }
  0x5b   : > { %513 = vrot.lane.b32.xlu0 %v507_v20, %s999_s4  ;;  %561 = vst [vmem:[#allocation1] ss:$4 sm:$0xff] %v190_v0 }
  0x5e   : > { %517 = vrot.lane.b32.xlu2 %v511_v19, %s999_s4  ;;  %s813_s4 = sshll.u32 %s693_s28, 3 }
  0x62   : > { %v566_v21 = vld.sshfl [vmem:[#allocation1 + $0x10] sm:$0xff pattern:$0x73625140]  ;;  %v564_v22 = vld.sshfl [vmem:[#allocation1 + $0x8] sm:$0xff pattern:$0x73625140] }
  0x63   : > { %570 = vrot.lane.b32.xlu1 %v564_v22, %s1000_s5  ;;  %v562_v23 = vld.sshfl [vmem:[#allocation1] sm:$0xff pattern:$0x73625140] }
  0x64   : > { %568 = vrot.lane.b32.xlu0 %v562_v23, %s1000_s5  ;;  %616 = vst [vmem:[#allocation1] ss:$4 sm:$0xff] %v190_v0  ;;  %v804_v23 = vld [vmem:[%s1217_s1 + $0x1c] sm:$0xf] }
  0x66   : > { %572 = vrot.lane.b32.xlu2 %v566_v21, %s1000_s5  ;;  %s695_s5 = scalar_lea.hbm %s1219_s3, %s813_s4 }
  0x67   : > { %s699_s8 = sshll.u32 %s695_s5, 4  ;;  %s700_s8 = int_to_ptr.hbm [resolvable:$true] %s699_s8 }
  0x68   : > { %s912_s10 = sshra.s32 %s700_s8, 4  ;;  %s913_s10 = int_to_ptr.hbm [resolvable:$true] %s912_s10 }
  0x69   : > { %s914_s11 = scalar_lea.hbm %s913_s10, 16  ;;  %p919_p2 = scmp.lt.s32.totalorder %s913_s10, %s1219_s3 }
  0x6a   : > { %p915_p13 = scmp.ne.s32.totalorder %s913_s10, %s914_s11  ;;  %p920_p4 = scmp.lt.s32.totalorder %s918_s24, %s914_s11 }
  0x6b   : > { %v619_v24 = vld.sshfl [vmem:[#allocation1 + $0x8] sm:$0xff pattern:$0x73625140]  ;;  %v617_v25 = vld.sshfl [vmem:[#allocation1] sm:$0xff pattern:$0x73625140] }
  0x6c   : > { %625 = vrot.lane.b32.xlu1 %v619_v24, %s1001_s6  ;;  %623 = vrot.lane.b32.xlu0 %v617_v25, %s1001_s6  ;;  %v621_v26 = vld.sshfl [vmem:[#allocation1 + $0x10] sm:$0xff pattern:$0x73625140]  ;;  %p916_p0 = pnand %p915_p13, %p1074_p3  ;;  %p921_p5 = por %p920_p4, %p919_p2 }
  0x6e   : > { %627 = vrot.lane.b32.xlu2 %v621_v26, %s1001_s6  ;;  %s177_s6 = scalar_lea.vmem [#allocation2], %s780_s29  ;;  %p917_p1 = pneg %p916_p0 }
  0x6f   : > { %s697_s7 = sshll.u32 %s177_s6, 4  ;;  %s698_s7 = int_to_ptr.vmem [resolvable:$true] %s697_s7 }
  0x70   : > { %p922_p6 = pnand %p921_p5, %p917_p1 }
  0x74   : > { %672 = vperm.xlu0 %897, %v669_v6  }
  0x90   : > { %v296_v30 = vpop.permute.xlu2 %295 }
  0x97   : > { %v203_v31 = vpop.permute.xlu0 %202  ;;  %v207_v33 = vpop.permute.xlu1 %206 }
  0x98   : > { %v298_v32 = vpop.permute.xlu2 %297 }
  0x99   : > { %v301_v34 = vsel %vm299_vm2, %v296_v30, %v298_v32 }
  0x9a   : > { %v309_v38 = vsel %vm215_vm0, %v301_v34, 0 }
  0x9f   : > { %v205_v35 = vpop.permute.xlu0 %204 }
  0xa0   : > { %v209_v36 = vsel %vm208_vm3, %v203_v31, %v205_v35  ;;  %v210_v37 = vsel %vm208_vm3, %v205_v35, %v207_v33  ;;  %v353_v45 = vpop.permute.xlu2 %352  ;;  %v807_v31 = vld [vmem:[%s1217_s1 + $0x20] sm:$0xf] }
  0xa1   : > { %v217_v39 = vsel %vm215_vm0, %v209_v36, 0  ;;  %v220_v40 = vsel %vm215_vm0, %v210_v37, 0 }
  0xa2   : > { %229 = vmatpush.bf16.msra.mxu0 %v217_v39  ;;  %242 = vmatpush.bf16.msra.mxu1 %v220_v40 }
  0xa5   : > { %785 = vmatmul.msk.bf16.vlgmr.msra.gmra.mxu0 %vm211_vm1, %v784_v41  ;;  %786 = vmatmul.msk.bf16.vlgmr.msra.gmra.mxu1 %vm211_vm1, %v784_v41 }
  0xa6   : > { %331 = vmatpush.bf16.msrb.mxu1 %v309_v38 }
  0xa8   : > { %v294_v42 = vpop.permute.xlu1 %293  ;;  %v408_v54 = vpop.permute.xlu2 %407 }
  0xa9   : > { %v300_v43 = vsel %vm299_vm2, %v294_v42, %v296_v30 }
  0xaa   : > { %v306_v44 = vsel %vm215_vm0, %v300_v43, 0 }
  0xab   : > { %318 = vmatpush.bf16.msrb.mxu0 %v306_v44 }
  0xb0   : > { %v463_v61 = vpop.permute.xlu2 %462 }
  0xb1   : > { %v351_v46 = vpop.permute.xlu1 %350 }
  0xb2   : > { %v349_v47 = vpop.permute.xlu0 %348  ;;  %v356_v48 = vsel %vm354_vm4, %v351_v46, %v353_v45 }
  0xb3   : > { %v355_v50 = vsel %vm354_vm4, %v349_v47, %v351_v46  ;;  %v364_v51 = vsel %vm215_vm0, %v356_v48, 0 }
  0xb4   : > { %v361_v52 = vsel %vm215_vm0, %v355_v50, 0  ;;  %386 = vmatpush.bf16.msrb.mxu3 %v364_v51 }
  0xb5   : > { %373 = vmatpush.bf16.msrb.mxu2 %v361_v52  ;;  %790 = vmatmul.msk.bf16.vlgmr.msrb.gmra.mxu0 %vm211_vm1, %v789_v49  ;;  %v267_v32 = vpop.f32.mrf.mxu2  ;;  %v280_v33 = vpop.f32.mrf.mxu3 }
  0xb6   : > { %791 = vmatmul.msk.bf16.vlgmr.msrb.gmra.mxu1 %vm211_vm1, %v789_v49 }
  0xb7   : > { %794 = vmatmul.msk.bf16.vlgmr.msrb.gmra.mxu3 %vm211_vm1, %v792_v53 }
  0xb8   : > { %793 = vmatmul.msk.bf16.vlgmr.msrb.gmra.mxu2 %vm211_vm1, %v792_v53  ;;  %v518_v8 = vpop.permute.xlu2 %517 }
  0xba   : > { %v406_v55 = vpop.permute.xlu1 %405 }
  0xbb   : > { %v411_v56 = vsel %vm409_vm5, %v406_v55, %v408_v54  ;;  %v404_v57 = vpop.permute.xlu0 %403 }
  0xbc   : > { %v419_v58 = vsel %vm215_vm0, %v411_v56, 0  ;;  %v410_v59 = vsel %vm409_vm5, %v404_v57, %v406_v55 }
  0xbd   : > { %v416_v60 = vsel %vm215_vm0, %v410_v59, 0  ;;  %441 = vmatpush.bf16.msra.mxu1 %v419_v58  ;;  %v269_v34 = vpop.f32.mrf.mxu2  ;;  %v282_v35 = vpop.f32.mrf.mxu3 }
  0xbe   : > { %428 = vmatpush.bf16.msra.mxu0 %v416_v60 }
  0xc0   : > { %v573_v16 = vpop.permute.xlu2 %572 }
  0xc3   : > { %v461_v63 = vpop.permute.xlu1 %460 }
  0xc4   : > { %v466_v0 = vsel %vm464_vm6, %v461_v63, %v463_v61  ;;  %v459_v1 = vpop.permute.xlu0 %458 }
  0xc5   : > { %v474_v2 = vsel %vm215_vm0, %v466_v0, 0  ;;  %v465_v3 = vsel %vm464_vm6, %v459_v1, %v461_v63  ;;  %796 = vmatmul.msk.bf16.vlgmr.msra.gmra.mxu0 %vm211_vm1, %v795_v62 }
  0xc6   : > { %v471_v4 = vsel %vm215_vm0, %v465_v3, 0  ;;  %496 = vmatpush.bf16.msra.mxu3 %v474_v2  ;;  %797 = vmatmul.msk.bf16.vlgmr.msra.gmra.mxu1 %vm211_vm1, %v795_v62 }
  0xc7   : > { %483 = vmatpush.bf16.msra.mxu2 %v471_v4 }
  0xc8   : > { %v628_v24 = vpop.permute.xlu2 %627 }
  0xc9   : > { %800 = vmatmul.msk.bf16.vlgmr.msra.gmra.mxu3 %vm211_vm1, %v798_v5 }
  0xca   : > { %799 = vmatmul.msk.bf16.vlgmr.msra.gmra.mxu2 %vm211_vm1, %v798_v5 }
  0xcc   : > { %v516_v9 = vpop.permute.xlu1 %515 }
  0xcd   : > { %v521_v10 = vsel %vm519_vm7, %v516_v9, %v518_v8  ;;  %v514_v11 = vpop.permute.xlu0 %513 }
  0xce   : > { %v529_v12 = vsel %vm215_vm0, %v521_v10, 0  ;;  %v520_v13 = vsel %vm519_vm7, %v514_v11, %v516_v9 }
  0xcf   : > { %v526_v14 = vsel %vm215_vm0, %v520_v13, 0  ;;  %551 = vmatpush.bf16.msrb.mxu1 %v529_v12 }
  0xd0   : > { %538 = vmatpush.bf16.msrb.mxu0 %v526_v14 }
  0xd5   : > { %v571_v17 = vpop.permute.xlu1 %570  ;;  %802 = vmatmul.msk.bf16.vlgmr.msrb.gmra.mxu0 %vm211_vm1, %v801_v15 }
  0xd6   : > { %v576_v18 = vsel %vm574_vm8, %v571_v17, %v573_v16  ;;  %v569_v19 = vpop.permute.xlu0 %568  ;;  %803 = vmatmul.msk.bf16.vlgmr.msrb.gmra.mxu1 %vm211_vm1, %v801_v15 }
  0xd7   : > { %v584_v20 = vsel %vm215_vm0, %v576_v18, 0  ;;  %v575_v21 = vsel %vm574_vm8, %v569_v19, %v571_v17 }
  0xd8   : > { %v581_v22 = vsel %vm215_vm0, %v575_v21, 0  ;;  %606 = vmatpush.bf16.msrb.mxu3 %v584_v20 }
  0xd9   : > { %593 = vmatpush.bf16.msrb.mxu2 %v581_v22 }
  0xdb   : > { %806 = vmatmul.msk.bf16.vlgmr.msrb.gmra.mxu3 %vm211_vm1, %v804_v23 }
  0xdc   : > { %805 = vmatmul.msk.bf16.vlgmr.msrb.gmra.mxu2 %vm211_vm1, %v804_v23 }
  0xde   : > { %v626_v25 = vpop.permute.xlu1 %625  ;;  %v624_v26 = vpop.permute.xlu0 %623 }
  0xdf   : > { %v631_v27 = vsel %vm629_vm9, %v626_v25, %v628_v24  ;;  %v630_v28 = vsel %vm629_vm9, %v624_v26, %v626_v25 }
  0xe0   : > { %v639_v29 = vsel %vm215_vm0, %v631_v27, 0  ;;  %v636_v30 = vsel %vm215_vm0, %v630_v28, 0 }
  0xe1   : > { %648 = vmatpush.bf16.msra.mxu0 %v636_v30  ;;  %661 = vmatpush.bf16.msra.mxu1 %v639_v29 }
  0xe5   : > { %808 = vmatmul.msk.bf16.vlgmr.msra.gmra.mxu0 %vm211_vm1, %v807_v31 }
  0xe6   : > { %809 = vmatmul.msk.bf16.vlgmr.msra.gmra.mxu1 %vm211_vm1, %v807_v31  ;;  %v673_v13 = vpop.permute.xlu0 %672 }
 0x122   : > { %v231_v36 = vpop.f32.mrf.mxu0  ;;  %v244_v37 = vpop.f32.mrf.mxu1 }
 0x123   : > { %v268_v57 = vadd.f32 %v267_v32, %v231_v36  ;;  %v281_v59 = vadd.f32 %v280_v33, %v244_v37 }
 0x12a   : > { %v233_v38 = vpop.f32.mrf.mxu0  ;;  %v246_v39 = vpop.f32.mrf.mxu1 }
 0x132   : > { %v320_v40 = vpop.f32.mrf.mxu0 }
 0x133   : > { %v333_v41 = vpop.f32.mrf.mxu1  ;;  %v337_v60 = vadd.f32 %v320_v40, %v268_v57 }
 0x134   : > { %v338_v61 = vadd.f32 %v333_v41, %v281_v59 }
 0x13a   : > { %v388_v42 = vpop.f32.mrf.mxu3  ;;  %v322_v43 = vpop.f32.mrf.mxu0 }
 0x13b   : > { %v375_v44 = vpop.f32.mrf.mxu2  ;;  %v335_v45 = vpop.f32.mrf.mxu1  ;;  %v393_v63 = vadd.f32 %v388_v42, %v338_v61 }
 0x13c   : > { %v392_v62 = vadd.f32 %v375_v44, %v337_v60 }
 0x142   : > { %v390_v46 = vpop.f32.mrf.mxu3  ;;  %v430_v47 = vpop.f32.mrf.mxu0 }
 0x143   : > { %v377_v48 = vpop.f32.mrf.mxu2  ;;  %v443_v49 = vpop.f32.mrf.mxu1  ;;  %v447_v1 = vadd.f32 %v430_v47, %v392_v62 }
 0x144   : > { %v448_v3 = vadd.f32 %v443_v49, %v393_v63 }
 0x14a   : > { %v432_v50 = vpop.f32.mrf.mxu0 }
 0x14b   : > { %v445_v51 = vpop.f32.mrf.mxu1 }
 0x14c   : > { %v498_v52 = vpop.f32.mrf.mxu3 }
 0x14d   : > { %v485_v53 = vpop.f32.mrf.mxu2  ;;  %v503_v5 = vadd.f32 %v498_v52, %v448_v3 }
 0x14e   : > { %v502_v4 = vadd.f32 %v485_v53, %v447_v1 }
 0x152   : > { %v540_v54 = vpop.f32.mrf.mxu0 }
 0x153   : > { %v553_v55 = vpop.f32.mrf.mxu1  ;;  %v557_v7 = vadd.f32 %v540_v54, %v502_v4 }
 0x154   : > { %v500_v56 = vpop.f32.mrf.mxu3  ;;  %v558_v9 = vadd.f32 %v553_v55, %v503_v5 }
 0x155   : > { %v487_v58 = vpop.f32.mrf.mxu2 }
 0x15a   : > { %v542_v0 = vpop.f32.mrf.mxu0 }
 0x15b   : > { %v555_v2 = vpop.f32.mrf.mxu1 }
 0x15e   : > { %v608_v6 = vpop.f32.mrf.mxu3 }
 0x15f   : > { %v595_v8 = vpop.f32.mrf.mxu2  ;;  %v613_v11 = vadd.f32 %v608_v6, %v558_v9 }
 0x160   : > { %v612_v10 = vadd.f32 %v595_v8, %v557_v7 }
 0x162   : > { %v650_v12 = vpop.f32.mrf.mxu0 }
 0x163   : > { %v667_v14 = vadd.f32 %v650_v12, %v612_v10  ;;  %v663_v15 = vpop.f32.mrf.mxu1 }
 0x164   : > { %v668_v16 = vadd.f32 %v663_v15, %v613_v11 }
 0x165   : > { %v675_v17 = vadd.f32 %v673_v13, %v667_v14 }
 0x166   : > { %v676_v18 = vadd.f32 %v673_v13, %v668_v16  ;;  %v610_v19 = vpop.f32.mrf.mxu3 }
 0x167   : > { %v677_v20 = vmax.f32 %v675_v17, 0.0  ;;  %v597_v21 = vpop.f32.mrf.mxu2 }
 0x168   : > { %v678_v22 = vmax.f32 %v676_v18, 0.0 }
 0x169   : > { %679 = vst [vmem:[%s177_s6] sm:$0xff] %v677_v20 }
 0x16a   : > { %680 = vst [vmem:[%s177_s6 + $0x8] sm:$0xff] %v678_v22  ;;  %v652_v23 = vpop.f32.mrf.mxu0 }
 0x16b   : > { %v665_v24 = vpop.f32.mrf.mxu1 }
 0x16c   : > { %925 = shalt.err (!%p922_p6)
}
 0x16d   : > { %817 = dma.vmem_to_hbm [thread:$0]  (%p1074_p3), %s698_s7, 256, %s700_s8, %s682_s9  }
 0x16e PF: > { %p823_p7 = scmp.ge.s32.totalorder %s992_s19, 2  ;;  %s711_s27 = sand.u32 1, %s964_s12  }
 0x16f   : > { %s712_s4 = scalar_lea.sflag [#allocation3], %s711_s27 }
 0x170   : > { %p820_p9 = pnand %p823_p7, %p1083_p8 }
 0x172   : > { %p821_p10 = pneg %p820_p9 }
 0x174   : > { %959 = dma.done.wait (%p821_p10), %s712_s4, 256  }
 0x175   : > { %961 = vsyncadd (%p821_p10), %s712_s4, 4294967040  ;;  %s16_s19 = sadd.s32 1, %s992_s19   ;;  %s1222_s12 = smov %s968_s13 }
 0x176   : > { %p13_p11 = scmp.ge.s32.totalorder %s16_s19, 6   ;;  %s1223_s13 = smov %s972_s14 }
 0x177   : > { %s1224_s14 = smov %s1092_s30  ;;  %s1225_s15 = smov %s984_s17 }
 0x178   : > { %s1226_s16 = smov %s988_s18  ;;  %s1227_s17 = smov %s1230_s22 }
 0x179   : > { %s1228_s18 = smov %s1234_s23  ;;  %15 = sbr.rel (!%p13_p11) target bundleno = 5 (0x5), region = 76 }
 0x17e   :  { %718 = vsyncpa [#allocation3], 1 }
 0x17f   :  { %720 = vsyncpa [#allocation3 + $0x1], 1 }

</bundles_post_ra>
